<compile_context>
chip_gen: v5e
topology: v5e:2x2
jax: 0.10.0
libtpu: 0.0.40
codegen_flags: <defaults>
</compile_context>

<pallas_src>
import jax
import jax.numpy as jnp
from jax.experimental import pallas as pl
from jax.experimental.pallas import tpu as pltpu


def mlp_kernel(x_ref, w1_ref, b1_ref, w2_ref, b2_ref, o_ref):
    # Cast the f32 x tile to bf16 *inside* the kernel (no extra HBM pass).
    x = x_ref[...].astype(jnp.bfloat16)
    # hidden = relu(x @ W1 + b1); bf16 MXU operands, f32 accumulation + VPU math.
    h = jnp.dot(x, w1_ref[...], preferred_element_type=jnp.float32)
    h = jnp.maximum(h + b1_ref[...], 0.0)            # b1 is (1, 256), broadcasts
    # out = h @ W2 + b2
    out = jnp.dot(h.astype(jnp.bfloat16), w2_ref[...],
                  preferred_element_type=jnp.float32)
    o_ref[...] = (out + b2_ref[...]).astype(o_ref.dtype)   # b2 is (1, 10)


def _round_up(n, m):
    return ((n + m - 1) // m) * m


def _chip_defaults():
    """Return (default_tb, vmem_limit_bytes, is_v7x) for the local TPU generation."""
    kind = ""
    try:
        kind = jax.devices()[0].device_kind.lower()
    except Exception:  # pragma: no cover - defensive; fall back to v6e-ish defaults
        pass
    is_v7x = ("v7" in kind) or ("7x" in kind)
    if is_v7x:
        # v7x: 64 MiB physical VMEM per TensorCore -> smaller tile, conservative cap.
        return 4096, 48 * 1024 * 1024, True
    # v5e / v6e: 128 MiB physical VMEM -> bigger tile to amortize per-step overhead.
    return 8192, 64 * 1024 * 1024, False


def mlp_forward(x, w1, b1, w2, b2, *, tb=None):
    """x: [B, 20] f32; w1: [20, 256]; b1: [256] or [1,256]; w2: [256, 10]; b2: [10] or [1,10].

    w1/w2 may be passed as bf16 (preferred; cast them once at init) or f32.
    Returns f32 [B, 10].
    """
    B, D_in = x.shape
    D_hid = w1.shape[1]
    D_out = w2.shape[1]

    default_tb, vmem_limit, is_v7x = _chip_defaults()
    if tb is None:
        tb = default_tb

    # Small-batch path: right-size the tile instead of streaming a huge padded one.
    # Multiple of 16 satisfies both f32 (8) and bf16 (16) sublane tiling.
    if B <= tb:
        tb = max(16, _round_up(B, 16))

    # No jnp.pad: Pallas masks the partial last block (OOB output rows are dropped;
    # batch rows are independent, so garbage in the read overhang never leaks).
    n_tiles = pl.cdiv(B, tb)

    # bf16 MXU operands (no-op if the caller already hands us bf16 weights);
    # biases stay f32 for the VPU epilogue.
    w1b = w1 if w1.dtype == jnp.bfloat16 else w1.astype(jnp.bfloat16)
    w2b = w2 if w2.dtype == jnp.bfloat16 else w2.astype(jnp.bfloat16)
    b1f = b1.astype(jnp.float32).reshape(1, D_hid)
    b2f = b2.astype(jnp.float32).reshape(1, D_out)

    # v7x: actually split the batch axis across the 2 TensorCores (each has its own
    # DMA path into HBM).  "parallel" elsewhere / for single-tile grids.
    core_parallel = getattr(pltpu, "CORE_PARALLEL", None)
    if is_v7x and n_tiles >= 2 and core_parallel is not None:
        dim_sem = (core_parallel,)
    else:
        dim_sem = ("parallel",)

    out = pl.pallas_call(
        mlp_kernel,
        out_shape=jax.ShapeDtypeStruct((B, D_out), jnp.float32),
        grid_spec=pltpu.PrefetchScalarGridSpec(
            num_scalar_prefetch=0,
            grid=(n_tiles,),
            in_specs=[
                # x streams one (tb, 20) f32 tile per grid step (bf16 cast in-kernel).
                pl.BlockSpec((tb, D_in), lambda i: (i, 0)),
                # Weights / biases: constant block index -> resident in VMEM.
                pl.BlockSpec((D_in, D_hid), lambda i: (0, 0)),
                pl.BlockSpec((1, D_hid), lambda i: (0, 0)),
                pl.BlockSpec((D_hid, D_out), lambda i: (0, 0)),
                pl.BlockSpec((1, D_out), lambda i: (0, 0)),
            ],
            out_specs=pl.BlockSpec((tb, D_out), lambda i: (i, 0)),
        ),
        compiler_params=pltpu.CompilerParams(
            dimension_semantics=dim_sem,
            vmem_limit_bytes=vmem_limit,   # generation-specific cap (see _chip_defaults)
        ),
    )(x.astype(jnp.float32), w1b, b1f, w2b, b2f)
    return out


def init_params(key):
    # Deterministic init mimicking nn.Linear default: U(-1/sqrt(fan_in), 1/sqrt(fan_in)).
    k1, k2, k3, k4 = jax.random.split(key, 4)
    bound1 = 1.0 / jnp.sqrt(20.0)
    bound2 = 1.0 / jnp.sqrt(256.0)
    w1 = jax.random.uniform(k1, (20, 256), jnp.float32, -bound1, bound1)
    b1 = jax.random.uniform(k2, (256,), jnp.float32, -bound1, bound1)
    w2 = jax.random.uniform(k3, (256, 10), jnp.float32, -bound2, bound2)
    b2 = jax.random.uniform(k4, (10,), jnp.float32, -bound2, bound2)
    return w1, b1, w2, b2


def _ref_f32(x, w1, b1, w2, b2):
    return jnp.maximum(x @ w1 + b1, 0.0) @ w2 + b2


if __name__ == "__main__":
    key = jax.random.PRNGKey(0)
    kx, kp, kx2, kx3 = jax.random.split(key, 4)
    w1, b1, w2, b2 = init_params(kp)          # f32 "master" params (for the reference)
    # Hoisted one-time MXU-dtype casts (removed from the per-call wrapper).
    w1b = w1.astype(jnp.bfloat16)
    w2b = w2.astype(jnp.bfloat16)

    # 1) Harness-scale small batch: B=2 -> right-sized 16-row tile, grid=(1,).
    B = 2
    x = jax.random.normal(kx, (B, 20), jnp.float32)
    out = jax.block_until_ready(mlp_forward(x, w1b, b1, w2b, b2))
    ref = _ref_f32(x, w1, b1, w2, b2)
    assert out.shape == (B, 10)
    # bf16 MXU operands -> loosened tolerance vs the f32 reference.
    assert jnp.allclose(out, ref, atol=5e-2, rtol=5e-2), "small-batch mismatch"

    # 2) Multi-tile + partial last block (no padding): B=1030, tb=256 -> grid=(5,).
    B2 = 1030
    x2 = jax.random.normal(kx2, (B2, 20), jnp.float32)
    out2 = jax.block_until_ready(mlp_forward(x2, w1b, b1, w2b, b2, tb=256))
    ref2 = _ref_f32(x2, w1, b1, w2, b2)
    assert out2.shape == (B2, 10)
    assert jnp.allclose(out2, ref2, atol=5e-2, rtol=5e-2), "multi-tile mismatch"

    # 3) Default large-tile path (generation-specific tb/vmem limit), partial block.
    B3 = 20000
    x3 = jax.random.normal(kx3, (B3, 20), jnp.float32)
    out3 = jax.block_until_ready(mlp_forward(x3, w1b, b1, w2b, b2))
    ref3 = _ref_f32(x3, w1, b1, w2, b2)
    assert out3.shape == (B3, 10)
    assert jnp.allclose(out3, ref3, atol=5e-2, rtol=5e-2), "large-batch mismatch"

    print("KERNEL_OK")
</pallas_src>

<mosaic_0001>
module attributes {stable_mosaic.version = 11 : i64} {
  func.func @mlp_kernel(%arg0: i32, %arg1: memref<16x20xf32, #tpu.memory_space<vmem>>, %arg2: memref<20x256xbf16, #tpu.memory_space<vmem>>, %arg3: memref<1x256xf32, #tpu.memory_space<vmem>>, %arg4: memref<256x10xbf16, #tpu.memory_space<vmem>>, %arg5: memref<1x10xf32, #tpu.memory_space<vmem>>, %arg6: memref<16x10xf32, #tpu.memory_space<vmem>>) attributes {dimension_semantics = [#tpu.dimension_semantics<parallel>], iteration_bounds = array<i64: 1>, scalar_prefetch = 0 : i64, scratch_operands = 0 : i64, tpu.core_type = #tpu.core_type<tc>, window_params = [{transform_indices = @transform_0, window_bounds = array<i64: 16, 20>}, {pipeline_mode = #tpu.pipeline_mode<synchronous>, transform_indices = @transform_1, window_bounds = array<i64: 20, 256>}, {pipeline_mode = #tpu.pipeline_mode<synchronous>, transform_indices = @transform_2, window_bounds = array<i64: 1, 256>}, {pipeline_mode = #tpu.pipeline_mode<synchronous>, transform_indices = @transform_3, window_bounds = array<i64: 256, 10>}, {pipeline_mode = #tpu.pipeline_mode<synchronous>, transform_indices = @transform_4, window_bounds = array<i64: 1, 10>}, {transform_indices = @transform_5, window_bounds = array<i64: 16, 10>}]} {
    %c0 = arith.constant 0 : index
    %c0_0 = arith.constant 0 : index
    %0 = vector.load %arg1[%c0, %c0_0] : memref<16x20xf32, #tpu.memory_space<vmem>>, vector<16x20xf32>
    %1 = arith.truncf %0 : vector<16x20xf32> to vector<16x20xbf16>
    %c0_1 = arith.constant 0 : index
    %c0_2 = arith.constant 0 : index
    %2 = vector.load %arg2[%c0_1, %c0_2] : memref<20x256xbf16, #tpu.memory_space<vmem>>, vector<20x256xbf16>
    %cst = arith.constant dense<0.000000e+00> : vector<16x256xf32>
    %3 = tpu.matmul %1, %2, %cst {dimension_numbers = #tpu.dot_dimension_numbers<[1], [0], [0], [1], [0, 0, 1, 1], [], []>} : vector<16x20xbf16>, vector<20x256xbf16>, vector<16x256xf32> -> vector<16x256xf32>
    %c0_3 = arith.constant 0 : index
    %c0_4 = arith.constant 0 : index
    %4 = vector.load %arg3[%c0_3, %c0_4] : memref<1x256xf32, #tpu.memory_space<vmem>>, vector<1x256xf32>
    %5 = vector.broadcast %4 : vector<1x256xf32> to vector<16x256xf32>
    %6 = arith.addf %3, %5 : vector<16x256xf32>
    %cst_5 = arith.constant 0.000000e+00 : f32
    %7 = vector.broadcast %cst_5 : f32 to vector<16x256xf32>
    %8 = arith.maximumf %6, %7 : vector<16x256xf32>
    %9 = arith.truncf %8 : vector<16x256xf32> to vector<16x256xbf16>
    %c0_6 = arith.constant 0 : index
    %c0_7 = arith.constant 0 : index
    %10 = vector.load %arg4[%c0_6, %c0_7] : memref<256x10xbf16, #tpu.memory_space<vmem>>, vector<256x10xbf16>
    %cst_8 = arith.constant dense<0.000000e+00> : vector<16x10xf32>
    %11 = tpu.matmul %9, %10, %cst_8 {dimension_numbers = #tpu.dot_dimension_numbers<[1], [0], [0], [1], [0, 0, 1, 1], [], []>} : vector<16x256xbf16>, vector<256x10xbf16>, vector<16x10xf32> -> vector<16x10xf32>
    %c0_9 = arith.constant 0 : index
    %c0_10 = arith.constant 0 : index
    %12 = vector.load %arg5[%c0_9, %c0_10] : memref<1x10xf32, #tpu.memory_space<vmem>>, vector<1x10xf32>
    %13 = vector.broadcast %12 : vector<1x10xf32> to vector<16x10xf32>
    %14 = arith.addf %11, %13 : vector<16x10xf32>
    %c0_11 = arith.constant 0 : index
    %c0_12 = arith.constant 0 : index
    %15 = vector.load %arg6[%c0_11, %c0_12] : memref<16x10xf32, #tpu.memory_space<vmem>>, vector<16x10xf32>
    tpu.vector_store %arg6[%c0_11, %c0_12], %14 {strides = array<i32>} : memref<16x10xf32, #tpu.memory_space<vmem>>, vector<16x10xf32>,
    return
  }
  func.func @transform_0(%arg0: i32) -> (i32, i32) {
    %c0_i32 = arith.constant 0 : i32
    %c0_i32_0 = arith.constant 0 : i32
    return %arg0, %c0_i32 : i32, i32
  }
  func.func @transform_1(%arg0: i32) -> (i32, i32) {
    %c0_i32 = arith.constant 0 : i32
    %c0_i32_0 = arith.constant 0 : i32
    %c0_i32_1 = arith.constant 0 : i32
    return %c0_i32, %c0_i32_0 : i32, i32
  }
  func.func @transform_2(%arg0: i32) -> (i32, i32) {
    %c0_i32 = arith.constant 0 : i32
    %c0_i32_0 = arith.constant 0 : i32
    %c0_i32_1 = arith.constant 0 : i32
    return %c0_i32, %c0_i32_0 : i32, i32
  }
  func.func @transform_3(%arg0: i32) -> (i32, i32) {
    %c0_i32 = arith.constant 0 : i32
    %c0_i32_0 = arith.constant 0 : i32
    %c0_i32_1 = arith.constant 0 : i32
    return %c0_i32, %c0_i32_0 : i32, i32
  }
  func.func @transform_4(%arg0: i32) -> (i32, i32) {
    %c0_i32 = arith.constant 0 : i32
    %c0_i32_0 = arith.constant 0 : i32
    %c0_i32_1 = arith.constant 0 : i32
    return %c0_i32, %c0_i32_0 : i32, i32
  }
  func.func @transform_5(%arg0: i32) -> (i32, i32) {
    %c0_i32 = arith.constant 0 : i32
    %c0_i32_0 = arith.constant 0 : i32
    return %arg0, %c0_i32 : i32, i32
  }
}

</mosaic_0001>

<bundles_post_ra>
// kernel: tpu_custom_call.1
= control target key start
LH: loop header
LB: loop body
LE: loop exit
PB: predicated region body
PF: predicated region fallthrough
CT: control target
= control target key end

     0   :  { %10 = vsyncpa [#allocation3], 0  ;;  %vm53_vm0 = vcmask 1041408   ;;  %vm49_vm1 = vcmask 162816   ;;  %vm254_vm2 = vcmask 80896   ;;  %s508_s0 = inlined_call_operand.vmem [shape: f32[2,20], index: 0, kind: input, shape index: {}]   ;;  %s509_s1 = inlined_call_operand.vmem [shape: bf16[20,256], index: 1, kind: input, shape index: {}]   ;;  %s510_s2 = inlined_call_operand.vmem [shape: f32[1,256], index: 2, kind: input, shape index: {}]   ;;  %s511_s3 = inlined_call_operand.vmem [shape: bf16[256,10], index: 3, kind: input, shape index: {}]   ;;  %s512_s4 = inlined_call_operand.vmem [shape: f32[1,10], index: 4, kind: input, shape index: {}]   ;;  %s513_s5 = inlined_call_operand.hbm [shape: f32[2,10], index: 5, kind: output, shape index: {}]  }
   0x1   :  { %v27_v0 = vld [vmem:[%s509_s1 + $0x10] sm:$0x33]  ;;  %v277_v3 = vld [vmem:[%s509_s1] sm:$0xf]  ;;  %v350_v4 = vld [vmem:[%s509_s1 + $0x4] sm:$0xf0] }
   0x2   :  { %v41_v1 = vunpack.c.l.b16 %v27_v0  ;;  %v42_v2 = vunpack.c.h.b16 %v27_v0  ;;  %v358_v5 = vld [vmem:[%s511_s3 + $0x38] sm:$0xff]  ;;  %v349_v8 = vld [vmem:[%s509_s1 + $0x4] sm:$0xf]  ;;  %v279_v9 = vld [vmem:[%s509_s1 + $0x8] sm:$0xf0]  ;;  %v278_v15 = vor.u32 %v350_v4, %v277_v3 }
   0x3   :  { %v366_v10 = vld [vmem:[%s511_s3 + $0x78] sm:$0xff]  ;;  %226 = vmatpush.bf16.msra.mxu2 %v358_v5  ;;  %v357_v11 = vld [vmem:[%s511_s3 + $0x30] sm:$0xff]  ;;  %v282_v16 = vor.u32 %v349_v8, %v279_v9  ;;  %v22_v17 = vld [vmem:[%s508_s0] sm:$0xff] }
   0x4   :  { %v45_v6 = vpack.c.b16 %v41_v1, %v41_v1  ;;  %v46_v7 = vpack.c.b16 %v42_v2, %v42_v2  ;;  %240 = vmatpush.bf16.msra.mxu3 %v366_v10  ;;  %v365_v14 = vld [vmem:[%s511_s3 + $0x70] sm:$0xff]  ;;  %v23_v18 = vld [vmem:[%s508_s0 + $0x8] sm:$0xff]  ;;  %v355_v22 = vld [vmem:[%s511_s3 + $0x20] sm:$0xff] }
   0x5   :  { %v356_v19 = vld [vmem:[%s511_s3 + $0x28] sm:$0xff]  ;;  %v24_v20 = vpack.c.bf16 %v23_v18, %v22_v17  ;;  %v363_v23 = vld [vmem:[%s511_s3 + $0x60] sm:$0xff]  ;;  %v354_v24 = vld [vmem:[%s511_s3 + $0x18] sm:$0xff] }
   0x6   :  { %v55_v12 = vsel %vm53_vm0, %v45_v6, 0  ;;  %v58_v13 = vsel %vm53_vm0, %v46_v7, 0  ;;  %v364_v21 = vld [vmem:[%s511_s3 + $0x68] sm:$0xff]  ;;  %v362_v25 = vld [vmem:[%s511_s3 + $0x58] sm:$0xff]  ;;  %v353_v26 = vld [vmem:[%s511_s3 + $0x10] sm:$0xff] }
   0x7   :  { %66 = vmatpush.bf16.msra.mxu0 %v55_v12  ;;  %80 = vmatpush.bf16.msra.mxu1 %v58_v13  ;;  %v361_v27 = vld [vmem:[%s511_s3 + $0x50] sm:$0xff]  ;;  %v352_v28 = vld [vmem:[%s511_s3 + $0x8] sm:$0xff]  ;;  %v351_v30 = vld [vmem:[%s511_s3] sm:$0xff] }
   0x8   :  { %227 = vmatpush.bf16.msra.mxu2 %v357_v11  ;;  %241 = vmatpush.bf16.msra.mxu3 %v365_v14  ;;  %v360_v29 = vld [vmem:[%s511_s3 + $0x48] sm:$0xff]  ;;  %v359_v31 = vld [vmem:[%s511_s3 + $0x40] sm:$0xff] }
   0x9   :  { %v28_v32 = vld [vmem:[%s510_s2] sm:$0x3] }
   0xa   :  { %v30_v35 = vperm.slane %v28_v32, 0  ;;  %v31_v36 = vperm.slane %v28_v32, 1  ;;  %v370_v49 = vld [vmem:[%s512_s4] ss:$0 sm:$0xff] }
   0xb   :  { %67 = vmatpush.bf16.msra.mxu0 %v278_v15  ;;  %81 = vmatpush.bf16.msra.mxu1 %v282_v16 }
   0xc   :  { %228 = vmatpush.bf16.msra.mxu2 %v356_v19  ;;  %242 = vmatpush.bf16.msra.mxu3 %v364_v21 }
   0xe   :  { %283 = vmatmul.msk.bf16.vlgmr.msra.gmra.mxu0 %vm49_vm1, %v24_v20  ;;  %284 = vmatmul.msk.bf16.vlgmr.msra.gmra.mxu1 %vm49_vm1, %v24_v20 }
  0x10   :  { %229 = vmatpush.bf16.msra.mxu2 %v355_v22  ;;  %243 = vmatpush.bf16.msra.mxu3 %v363_v23 }
  0x14   :  { %230 = vmatpush.bf16.msra.mxu2 %v354_v24  ;;  %244 = vmatpush.bf16.msra.mxu3 %v362_v25 }
  0x18   :  { %231 = vmatpush.bf16.msra.mxu2 %v353_v26  ;;  %245 = vmatpush.bf16.msra.mxu3 %v361_v27 }
  0x1c   :  { %232 = vmatpush.bf16.msra.mxu2 %v352_v28  ;;  %246 = vmatpush.bf16.msra.mxu3 %v360_v29 }
  0x20   :  { %233 = vmatpush.bf16.msra.mxu2 %v351_v30  ;;  %247 = vmatpush.bf16.msra.mxu3 %v359_v31 }
  0x8b   :  { %v69_v33 = vpop.f32.mrf.mxu0  ;;  %v83_v34 = vpop.f32.mrf.mxu1 }
  0x8c   :  { %v70_v37 = vadd.f32 %v69_v33, %v30_v35  ;;  %v84_v38 = vadd.f32 %v83_v34, %v31_v36 }
  0x8e   :  { %v88_v43 = vmax.f32 %v70_v37, 0.0  ;;  %v89_v44 = vmax.f32 %v84_v38, 0.0 }
  0x93   :  { %v71_v39 = vpop.f32.mrf.mxu0  ;;  %v85_v40 = vpop.f32.mrf.mxu1 }
  0x94   :  { %v72_v41 = vadd.f32 %v71_v39, %v30_v35  ;;  %v86_v42 = vadd.f32 %v85_v40, %v31_v36 }
  0x96   :  { %v90_v45 = vmax.f32 %v72_v41, 0.0  ;;  %v91_v46 = vmax.f32 %v86_v42, 0.0 }
  0x98   :  { %v92_v47 = vpack.c.bf16 %v90_v45, %v88_v43  ;;  %v93_v48 = vpack.c.bf16 %v91_v46, %v89_v44 }
  0x9a   :  { %234 = vmatmul.bf16.vlgmr.msra.gmra.mxu2 %v92_v47  ;;  %248 = vmatmul.bf16.vlgmr.msra.gmra.mxu3 %v93_v48 }
 0x11d   :  { %v235_v50 = vpop.f32.mrf.mxu2  ;;  %v249_v51 = vpop.f32.mrf.mxu3 }
 0x11e   :  { %v236_v52 = vadd.f32 %v370_v49, %v235_v50 }
 0x120   :  { %v250_v53 = vadd.f32 %v249_v51, %v236_v52 }
 0x122   :  { %255 = vst.msk [vmem:[#allocation2] sm:$0xff] %vm254_vm2, %v250_v53 }
 0x125   :  { %v237_v54 = vpop.f32.mrf.mxu2  ;;  %v251_v56 = vpop.f32.mrf.mxu3 }
 0x126   :  { %v238_v55 = vadd.f32 %v370_v49, %v237_v54 }
 0x128   :  { %v252_v57 = vadd.f32 %v251_v56, %v238_v55 }
 0x12a   :  { %256 = vst.msk [vmem:[#allocation2 + $0x8] sm:$0xff] %vm254_vm2, %v252_v57 }
 0x12b   :  { %260 = vsyncadd [#allocation3], 224  ;;  %s263_s15 = sshll.u32 %s513_s5, 4  ;;  %s397_s16 = smov [#allocation2]   ;;  %s264_s15 = int_to_ptr.hbm [resolvable:$true] %s263_s15 }
 0x12c   :  { %s261_s17 = sshll.u32 %s397_s16, 4  ;;  %s398_s4 = smov 32   ;;  %s262_s17 = int_to_ptr.vmem [resolvable:$true] %s261_s17 }
 0x12d   :  { %s399_s18 = smov 2  }
 0x12e   :  { %269 = dma.vmem_to_hbm [thread:$0]  %s262_s17, 32, %s264_s15, [#allocation3], %s398_s4, %s398_s4, %s399_s18  }
 0x12f   :  { %395 = dma.done.wait [#allocation3], 256  }
 0x130   :  { %396 = vsyncadd [#allocation3], 4294967040 }
 0x131   :  { %274 = vsyncpa [#allocation3], 1 }

</bundles_post_ra>
